<compile_context>
chip_gen: v7x
topology: tpu7x:2x2x1
jax: 0.10.0
libtpu: 0.0.40
codegen_flags: <defaults>
</compile_context>

<pallas_src>
import functools

import jax
import jax.numpy as jnp
import numpy as np
from jax import lax
from jax.experimental import pallas as pl
from jax.experimental.pallas import tpu as pltpu

_LANE = 128
_SUBLANE = 8
_EPS = 1e-5


def _ceil_to(x, m):
    return ((x + m - 1) // m) * m


def _vmem_budget():
    try:
        return int(pltpu.get_tpu_info().vmem_capacity_bytes)
    except Exception:
        return 64 * 1024 * 1024          # conservative (v7x per-TC physical)


def _compiler_params(semantics, need_bytes):
    kwargs = dict(dimension_semantics=semantics)
    if need_bytes > 12 * 1024 * 1024:    # beyond the smallest default scoped limit
        budget = _vmem_budget()
        kwargs["vmem_limit_bytes"] = int(
            min(max(need_bytes * 5 // 4, 32 * 1024 * 1024), budget * 3 // 4))
    return pltpu.CompilerParams(**kwargs)


def _fast_recip(x):
    # EUP approximate reciprocal (free slot next to the softmax exp) plus one
    # Newton step -> full f32 accuracy without a VALU divide.
    r = pl.reciprocal(x, approx=True)
    return r * (2.0 - x * r)


def _small_k_matmul(w, x):
    """(M, K) @ (K, N).  For tiny K the MXU pads M/K to 128+ and runs at <0.1%
    utilisation, so emit K broadcast-FMAs on the VPU instead; fall back to the
    MXU for larger contraction dims."""
    k = w.shape[1]
    if k <= 32:
        acc = w[:, 0:1] * x[0:1, :]
        for kk in range(1, k):
            acc = acc + w[:, kk:kk + 1] * x[kk:kk + 1, :]
        return acc
    return jnp.dot(w, x, preferred_element_type=jnp.float32)


# ----------------------------------------------------------------------------
# Double-attention core for a single batch item (shared by both paths)
# ----------------------------------------------------------------------------
def _attention_core(x, wabv, babv, we, be, c_m, c_n):
    """x: (C, N);  wabv/babv: packed [convA; convB; convV] 1x1 weights;
    we/be: extension 1x1 conv.  Returns E: (C, N) f32 (pre-BatchNorm)."""
    abv = _small_k_matmul(wabv, x) + babv                  # (c_m + 2*c_n, N)
    a = abv[0:c_m]                                         # (c_m, N)
    bmat = abv[c_m:c_m + c_n]                              # (c_n, N)
    v = abv[c_m + c_n:c_m + 2 * c_n]                       # (c_n, N)

    # softmax over spatial positions (lanes); the min() clamp keeps physically
    # padded lanes of a ragged N finite (they are masked out of every
    # reduction / store downstream by Mosaic).
    bmax = jnp.max(bmat, axis=1, keepdims=True)
    bexp = jnp.exp(jnp.minimum(bmat - bmax, 0.0))
    bsm = bexp * _fast_recip(jnp.sum(bexp, axis=1, keepdims=True))

    # softmax over the c_n channels (sublanes) per spatial position
    vmax = jnp.max(v, axis=0, keepdims=True)
    vexp = jnp.exp(v - vmax)
    vsm = vexp * _fast_recip(jnp.sum(vexp, axis=0, keepdims=True))

    if c_n <= 8:
        # Z = (A @ Bs^T) @ Vs via c_n lane-reductions + broadcast FMAs.
        z = None
        for k in range(c_n):
            gk = jnp.sum(a * bsm[k:k + 1, :], axis=1, keepdims=True)   # (c_m, 1)
            zk = gk * vsm[k:k + 1, :]                                  # (c_m, N)
            z = zk if z is None else z + zk
    else:
        # TODO(synk): for ragged N this relies on Mosaic masking the padded
        #             contraction lanes of the MXU operands.
        g = lax.dot_general(a, bsm, (((1,), (1,)), ((), ())),
                            preferred_element_type=jnp.float32)        # (c_m, c_n)
        z = _small_k_matmul(g, vsm)                                    # (c_m, N)

    return _small_k_matmul(we, z) + be                                 # (C, N)


# ----------------------------------------------------------------------------
# Fused path: grid = (3 phases, batch); E stays resident in VMEM scratch.
# ----------------------------------------------------------------------------
def _fused_kernel(c_m, c_n, count, concat,
                  x_ref, wabv_ref, babv_ref, we_ref, be_ref,
                  gamma_ref, beta_ref, o_ref, e_scr, s_scr):
    phase = pl.program_id(0)
    g = pl.program_id(1)
    inv_count = 1.0 / count

    @pl.when(phase == 0)
    def _compute_e_and_sum():
        @pl.when(g == 0)
        def _init_stats():
            s_scr[...] = jnp.zeros_like(s_scr)
        e = _attention_core(x_ref[0], wabv_ref[...], babv_ref[...],
                            we_ref[...], be_ref[...], c_m, c_n)
        e_scr[g] = e
        s_scr[0] = s_scr[0] + jnp.sum(e, axis=1, keepdims=True)

    @pl.when(phase == 1)
    def _centered_sumsq():
        d = e_scr[g] - s_scr[0] * inv_count
        s_scr[1] = s_scr[1] + jnp.sum(d * d, axis=1, keepdims=True)

    @pl.when(phase == 2)
    def _bn_relu_residual():
        mean = s_scr[0] * inv_count
        var = s_scr[1] * inv_count                     # biased, two-pass
        inv = lax.rsqrt(var + _EPS)
        scale = gamma_ref[...] * inv                   # (C, 1)
        shift = beta_ref[...] - mean * scale
        y = jnp.maximum(e_scr[g] * scale + shift, 0.0)
        if concat:
            y = y + x_ref[0]
        o_ref[0] = y.astype(o_ref.dtype)


# ----------------------------------------------------------------------------
# Fallback path, stage 1: attention core + BN statistics, E staged as bf16.
# ----------------------------------------------------------------------------
def _stage1_kernel(c_m, c_n, x_ref, wabv_ref, babv_ref, we_ref, be_ref,
                   e_ref, s1_ref, s2_ref):
    e = _attention_core(x_ref[0], wabv_ref[...], babv_ref[...],
                        we_ref[...], be_ref[...], c_m, c_n)
    e_ref[0] = e.astype(e_ref.dtype)                  # bf16 staging
    s1_ref[0] = jnp.sum(e, axis=1, keepdims=True)     # stats from f32 E
    s2_ref[0] = jnp.sum(e * e, axis=1, keepdims=True)


# ----------------------------------------------------------------------------
# Fallback path, stage 2: dense (b*c, n) elementwise BN-apply + ReLU (+ x).
# ----------------------------------------------------------------------------
def _stage2_kernel(concat, *refs):
    if concat:
        e_ref, x_ref, sc_ref, sh_ref, o_ref = refs
    else:
        e_ref, sc_ref, sh_ref, o_ref = refs
    y = e_ref[...].astype(jnp.float32) * sc_ref[...] + sh_ref[...]
    y = jnp.maximum(y, 0.0)
    if concat:
        y = y + x_ref[...]
    o_ref[...] = y


# ----------------------------------------------------------------------------
# Wrapper
# ----------------------------------------------------------------------------
def double_attention_norm(x_nchw, params, concat=True, fused=None):
    b, c, h, w = x_nchw.shape
    n = h * w
    c_m = params["wa"].shape[0]
    c_n = params["wb"].shape[0]
    c_abv = c_m + 2 * c_n
    f32 = jnp.float32

    # (b, c, h, w) -> (b, c, n) is a free contiguous collapse (no pad / crop).
    xf = x_nchw.reshape(b, c, n).astype(f32)

    # Pack the three 1x1 projections into a single weight / bias slab.
    wabv = jnp.concatenate(
        [params["wa"], params["wb"], params["wv"]], axis=0).astype(f32)   # (c_abv, c)
    babv = jnp.concatenate(
        [params["ba"], params["bb"], params["bv"]], axis=0).reshape(c_abv, 1).astype(f32)
    we = params["we"].astype(f32)                                          # (c, c_m)
    be = params["be"].reshape(c, 1).astype(f32)
    gamma = params["gamma"].reshape(c, 1).astype(f32)
    beta = params["beta"].reshape(c, 1).astype(f32)

    # --- VMEM working-set estimates (physical tile padding included) ---
    n_pad = _ceil_to(n, _LANE)
    c_pad = _ceil_to(c, _SUBLANE)
    abv_pad = _ceil_to(c_abv, _SUBLANE)
    slab = n_pad * 4
    core_tmp = 8 * abv_pad * slab                       # rough core intermediates
    fused_need = b * c_pad * slab + 4 * c_pad * slab + core_tmp
    if fused is None:
        fused = fused_need <= _vmem_budget() // 2

    # ---------------------------------------------------------------- fused
    if fused:
        if concat:
            def x_index(p, g):                          # x needed in phases 0 and 2
                return (jnp.where(p == 1, 0, g), 0, 0)
        else:
            def x_index(p, g):                          # x needed in phase 0 only
                return (jnp.where(p == 0, g, 0), 0, 0)

        def out_index(p, g):                            # written in phase 2 only
            return (jnp.where(p == 2, g, 0), 0, 0)

        const2 = lambda p, g: (0, 0)

        out = pl.pallas_call(
            functools.partial(_fused_kernel, c_m, c_n, float(b * n), concat),
            out_shape=jax.ShapeDtypeStruct((b, c, n), f32),
            grid=(3, b),
            in_specs=[
                pl.BlockSpec((1, c, n), x_index),
                pl.BlockSpec((c_abv, c), const2),
                pl.BlockSpec((c_abv, 1), const2),
                pl.BlockSpec((c, c_m), const2),
                pl.BlockSpec((c, 1), const2),
                pl.BlockSpec((c, 1), const2),
                pl.BlockSpec((c, 1), const2),
            ],
            out_specs=pl.BlockSpec((1, c, n), out_index),
            scratch_shapes=[pltpu.VMEM((b, c, n), f32),      # resident E
                            pltpu.VMEM((2, c, 1), f32)],     # [sum, centred sumsq]
            compiler_params=_compiler_params(("arbitrary", "arbitrary"),
                                             fused_need),
        )(xf, wabv, babv, we, be, gamma, beta)
        return out.reshape(b, c, h, w)

    # ------------------------------------------------------------- fallback
    # Stage 1: per-batch attention core; E staged through HBM in bf16.
    const1 = lambda i: (0, 0)
    stage1_need = 2 * c_pad * slab + 2 * c_pad * n_pad * 2 + core_tmp
    e, s1, s2 = pl.pallas_call(
        functools.partial(_stage1_kernel, c_m, c_n),
        out_shape=(jax.ShapeDtypeStruct((b, c, n), jnp.bfloat16),
                   jax.ShapeDtypeStruct((b, c, 1), f32),
                   jax.ShapeDtypeStruct((b, c, 1), f32)),
        grid=(b,),
        in_specs=[
            pl.BlockSpec((1, c, n), lambda i: (i, 0, 0)),
            pl.BlockSpec((c_abv, c), const1),
            pl.BlockSpec((c_abv, 1), const1),
            pl.BlockSpec((c, c_m), const1),
            pl.BlockSpec((c, 1), const1),
        ],
        out_specs=(
            pl.BlockSpec((1, c, n), lambda i: (i, 0, 0)),
            pl.BlockSpec((1, c, 1), lambda i: (i, 0, 0)),
            pl.BlockSpec((1, c, 1), lambda i: (i, 0, 0)),
        ),
        compiler_params=_compiler_params(("parallel",), stage1_need),
    )(xf, wabv, babv, we, be)

    # BatchNorm statistics finalized in plain JAX (a (C,)-sized reduction).
    count = float(b * n)
    mean = jnp.sum(s1, axis=0) / count                      # (c, 1)
    msq = jnp.sum(s2, axis=0) / count
    var = jnp.maximum(msq - mean * mean, 0.0)               # one-pass, biased
    inv = lax.rsqrt(var + _EPS)
    scale_c = gamma * inv
    shift_c = beta - mean * scale_c

    # Stage 2: flatten to (b*c, n) for full-sublane, lane-dense tiles.
    rows = b * c
    scale_r = jnp.broadcast_to(scale_c.reshape(1, c), (b, c)).reshape(rows, 1)
    shift_r = jnp.broadcast_to(shift_c.reshape(1, c), (b, c)).reshape(rows, 1)
    e2 = e.reshape(rows, n)
    x2 = xf.reshape(rows, n)

    if rows % _SUBLANE == 0:
        row_tile = min(rows, 256)
    else:
        row_tile = rows                                      # full-dim block
    if n % _LANE == 0:
        n_tile = max(_LANE, min(n, ((2 << 20) // (4 * row_tile)) // _LANE * _LANE))
    else:
        n_tile = n                                           # full-dim (ragged) block
    grid2 = (pl.cdiv(rows, row_tile), pl.cdiv(n, n_tile))
    stage2_need = 2 * row_tile * n_tile * (4 + 4 + 2) + 4 * row_tile * 4

    if concat:
        operands = (e2, x2, scale_r, shift_r)
        in_specs = [
            pl.BlockSpec((row_tile, n_tile), lambda i, j: (i, j)),
            pl.BlockSpec((row_tile, n_tile), lambda i, j: (i, j)),
            pl.BlockSpec((row_tile, 1), lambda i, j: (i, 0)),
            pl.BlockSpec((row_tile, 1), lambda i, j: (i, 0)),
        ]
    else:
        operands = (e2, scale_r, shift_r)
        in_specs = [
            pl.BlockSpec((row_tile, n_tile), lambda i, j: (i, j)),
            pl.BlockSpec((row_tile, 1), lambda i, j: (i, 0)),
            pl.BlockSpec((row_tile, 1), lambda i, j: (i, 0)),
        ]

    out = pl.pallas_call(
        functools.partial(_stage2_kernel, concat),
        out_shape=jax.ShapeDtypeStruct((rows, n), f32),
        grid=grid2,
        in_specs=in_specs,
        out_specs=pl.BlockSpec((row_tile, n_tile), lambda i, j: (i, j)),
        compiler_params=_compiler_params(("parallel", "parallel"), stage2_need),
    )(*operands)

    return out.reshape(b, c, h, w)


# ----------------------------------------------------------------------------
# Pure-JAX reference (mirrors the PyTorch forward with K=1, training-mode BN)
# ----------------------------------------------------------------------------
def reference(x_nchw, params, concat=True):
    b, c, h, w = x_nchw.shape
    n = h * w
    xf = x_nchw.reshape(b, c, n).astype(jnp.float32)

    A = jnp.einsum('mc,bcn->bmn', params["wa"], xf) + params["ba"][None, :, None]
    B = jnp.einsum('kc,bcn->bkn', params["wb"], xf) + params["bb"][None, :, None]
    V = jnp.einsum('kc,bcn->bkn', params["wv"], xf) + params["bv"][None, :, None]

    Bs = jax.nn.softmax(B, axis=2)        # softmax over h*w
    Vs = jax.nn.softmax(V, axis=1)        # softmax over c_n

    G = jnp.einsum('bmn,bkn->bmk', A, Bs)
    Z = jnp.einsum('bmk,bkn->bmn', G, Vs)
    E = jnp.einsum('cm,bmn->bcn', params["we"], Z) + params["be"][None, :, None]

    mean = jnp.mean(E, axis=(0, 2), keepdims=True)
    var = jnp.mean((E - mean) ** 2, axis=(0, 2), keepdims=True)
    y = (E - mean) * lax.rsqrt(var + _EPS)
    y = y * params["gamma"][None, :, None] + params["beta"][None, :, None]
    y = jnp.maximum(y, 0.0)
    if concat:
        y = y + xf
    return y.reshape(b, c, h, w)


if __name__ == "__main__":
    def make_params(key, in_channels, c_m, c_n):
        ks = jax.random.split(key, 8)
        return {
            "wa": jax.random.normal(ks[0], (c_m, in_channels), jnp.float32) * 0.3,
            "ba": jax.random.normal(ks[1], (c_m,), jnp.float32) * 0.1,
            "wb": jax.random.normal(ks[2], (c_n, in_channels), jnp.float32) * 0.3,
            "bb": jax.random.normal(ks[3], (c_n,), jnp.float32) * 0.1,
            "wv": jax.random.normal(ks[4], (c_n, in_channels), jnp.float32) * 0.3,
            "bv": jax.random.normal(ks[5], (c_n,), jnp.float32) * 0.1,
            "we": jax.random.normal(ks[6], (in_channels, c_m), jnp.float32) * 0.3,
            "be": jax.random.normal(ks[7], (in_channels,), jnp.float32) * 0.1,
            "gamma": jnp.ones((in_channels,), jnp.float32),   # BatchNorm2d defaults
            "beta": jnp.zeros((in_channels,), jnp.float32),
        }

    key = jax.random.PRNGKey(0)
    k1, k2, k3, k4, k5, k6, k7, k8 = jax.random.split(key, 8)

    # Case 1: fused path, lane-aligned spatial size, concat=True.
    p1 = make_params(k1, 4, 4, 4)
    x1 = jax.random.normal(k2, (2, 4, 16, 16), jnp.float32)
    o1 = jax.block_until_ready(double_attention_norm(x1, p1, concat=True))
    np.testing.assert_allclose(np.asarray(o1), np.asarray(reference(x1, p1, True)),
                               rtol=2e-3, atol=2e-3)

    # Case 2: fused path, ragged spatial size (h*w not a multiple of 128),
    # c_m != c_n, concat=False.
    p2 = make_params(k3, 4, 8, 4)
    x2 = jax.random.normal(k4, (4, 4, 12, 12), jnp.float32)
    o2 = jax.block_until_ready(double_attention_norm(x2, p2, concat=False))
    np.testing.assert_allclose(np.asarray(o2), np.asarray(reference(x2, p2, False)),
                               rtol=2e-3, atol=2e-3)

    # Case 3: forced two-stage fallback (bf16 E staging), aligned, concat=True.
    # Looser tolerance accounts for the intentional bf16 round-trip of E.
    p3 = make_params(k5, 4, 4, 4)
    x3 = jax.random.normal(k6, (2, 4, 16, 16), jnp.float32)
    o3 = jax.block_until_ready(double_attention_norm(x3, p3, concat=True, fused=False))
    np.testing.assert_allclose(np.asarray(o3), np.asarray(reference(x3, p3, True)),
                               rtol=5e-2, atol=5e-2)

    # Case 4: forced fallback, ragged spatial size, odd batch, concat=True.
    p4 = make_params(k7, 4, 4, 4)
    x4 = jax.random.normal(k8, (3, 4, 12, 12), jnp.float32)
    o4 = jax.block_until_ready(double_attention_norm(x4, p4, concat=True, fused=False))
    np.testing.assert_allclose(np.asarray(o4), np.asarray(reference(x4, p4, True)),
                               rtol=5e-2, atol=5e-2)

    print("KERNEL_OK")
</pallas_src>

<mosaic_0001>
module attributes {stable_mosaic.version = 11 : i64} {
  func.func @_fused_kernel(%arg0: i32, %arg1: i32, %arg2: memref<1x4x256xf32, #tpu.memory_space<vmem>>, %arg3: memref<12x4xf32, #tpu.memory_space<vmem>>, %arg4: memref<12x1xf32, #tpu.memory_space<vmem>>, %arg5: memref<4x4xf32, #tpu.memory_space<vmem>>, %arg6: memref<4x1xf32, #tpu.memory_space<vmem>>, %arg7: memref<4x1xf32, #tpu.memory_space<vmem>>, %arg8: memref<4x1xf32, #tpu.memory_space<vmem>>, %arg9: memref<1x4x256xf32, #tpu.memory_space<vmem>>, %arg10: memref<2x4x256xf32, #tpu.memory_space<vmem>>, %arg11: memref<2x4x1xf32, #tpu.memory_space<vmem>>) attributes {dimension_semantics = [#tpu.dimension_semantics<arbitrary>, #tpu.dimension_semantics<arbitrary>], iteration_bounds = array<i64: 3, 2>, scalar_prefetch = 0 : i64, scratch_operands = 2 : i64, tpu.core_type = #tpu.core_type<tc>, window_params = [{transform_indices = @transform_0, window_bounds = array<i64: 1, 4, 256>}, {pipeline_mode = #tpu.pipeline_mode<synchronous>, transform_indices = @transform_1, window_bounds = array<i64: 12, 4>}, {pipeline_mode = #tpu.pipeline_mode<synchronous>, transform_indices = @transform_2, window_bounds = array<i64: 12, 1>}, {pipeline_mode = #tpu.pipeline_mode<synchronous>, transform_indices = @transform_3, window_bounds = array<i64: 4, 4>}, {pipeline_mode = #tpu.pipeline_mode<synchronous>, transform_indices = @transform_4, window_bounds = array<i64: 4, 1>}, {pipeline_mode = #tpu.pipeline_mode<synchronous>, transform_indices = @transform_5, window_bounds = array<i64: 4, 1>}, {pipeline_mode = #tpu.pipeline_mode<synchronous>, transform_indices = @transform_6, window_bounds = array<i64: 4, 1>}, {transform_indices = @transform_7, window_bounds = array<i64: 1, 4, 256>}]} {
    %c0_i32 = arith.constant 0 : i32
    %0 = arith.cmpi eq, %arg0, %c0_i32 : i32
    %1 = arith.extui %0 : i1 to i32
    %c0_i32_0 = arith.constant 0 : i32
    %2 = arith.cmpi ne, %1, %c0_i32_0 : i32
    scf.if %2 {
      %c0_i32_3 = arith.constant 0 : i32
      %9 = arith.cmpi eq, %arg1, %c0_i32_3 : i32
      %10 = arith.extui %9 : i1 to i32
      %c0_i32_4 = arith.constant 0 : i32
      %11 = arith.cmpi ne, %10, %c0_i32_4 : i32
      scf.if %11 {
        %cst_34 = arith.constant 0.000000e+00 : f32
        %152 = vector.broadcast %cst_34 : f32 to vector<2x4x1xf32>
        %c0_35 = arith.constant 0 : index
        %c0_36 = arith.constant 0 : index
        %c0_37 = arith.constant 0 : index
        %153 = vector.load %arg11[%c0_35, %c0_36, %c0_37] : memref<2x4x1xf32, #tpu.memory_space<vmem>>, vector<2x4x1xf32>
        tpu.vector_store %arg11[%c0_35, %c0_36, %c0_37], %152 {strides = array<i32>} : memref<2x4x1xf32, #tpu.memory_space<vmem>>, vector<2x4x1xf32>,
      } else {
      }
      %c0 = arith.constant 0 : index
      %c0_5 = arith.constant 0 : index
      %c0_6 = arith.constant 0 : index
      %12 = vector.load %arg2[%c0, %c0_5, %c0_6] : memref<1x4x256xf32, #tpu.memory_space<vmem>>, vector<1x4x256xf32>
      %13 = vector.shape_cast %12 : vector<1x4x256xf32> to vector<4x256xf32>
      %c0_7 = arith.constant 0 : index
      %c0_8 = arith.constant 0 : index
      %14 = vector.load %arg3[%c0_7, %c0_8] : memref<12x4xf32, #tpu.memory_space<vmem>>, vector<12x4xf32>
      %c0_9 = arith.constant 0 : index
      %c0_10 = arith.constant 0 : index
      %15 = vector.load %arg4[%c0_9, %c0_10] : memref<12x1xf32, #tpu.memory_space<vmem>>, vector<12x1xf32>
      %c0_11 = arith.constant 0 : index
      %c0_12 = arith.constant 0 : index
      %16 = vector.load %arg5[%c0_11, %c0_12] : memref<4x4xf32, #tpu.memory_space<vmem>>, vector<4x4xf32>
      %c0_13 = arith.constant 0 : index
      %c0_14 = arith.constant 0 : index
      %17 = vector.load %arg6[%c0_13, %c0_14] : memref<4x1xf32, #tpu.memory_space<vmem>>, vector<4x1xf32>
      %18 = vector.extract_strided_slice %14 {offsets = [0, 0], sizes = [12, 1], strides = [1, 1]} : vector<12x4xf32> to vector<12x1xf32>
      %19 = vector.extract_strided_slice %13 {offsets = [0, 0], sizes = [1, 256], strides = [1, 1]} : vector<4x256xf32> to vector<1x256xf32>
      %20 = vector.broadcast %18 : vector<12x1xf32> to vector<12x256xf32>
      %21 = vector.broadcast %19 : vector<1x256xf32> to vector<12x256xf32>
      %22 = arith.mulf %20, %21 : vector<12x256xf32>
      %23 = vector.extract_strided_slice %14 {offsets = [0, 1], sizes = [12, 1], strides = [1, 1]} : vector<12x4xf32> to vector<12x1xf32>
      %24 = vector.extract_strided_slice %13 {offsets = [1, 0], sizes = [1, 256], strides = [1, 1]} : vector<4x256xf32> to vector<1x256xf32>
      %25 = vector.broadcast %23 : vector<12x1xf32> to vector<12x256xf32>
      %26 = vector.broadcast %24 : vector<1x256xf32> to vector<12x256xf32>
      %27 = arith.mulf %25, %26 : vector<12x256xf32>
      %28 = arith.addf %22, %27 : vector<12x256xf32>
      %29 = vector.extract_strided_slice %14 {offsets = [0, 2], sizes = [12, 1], strides = [1, 1]} : vector<12x4xf32> to vector<12x1xf32>
      %30 = vector.extract_strided_slice %13 {offsets = [2, 0], sizes = [1, 256], strides = [1, 1]} : vector<4x256xf32> to vector<1x256xf32>
      %31 = vector.broadcast %29 : vector<12x1xf32> to vector<12x256xf32>
      %32 = vector.broadcast %30 : vector<1x256xf32> to vector<12x256xf32>
      %33 = arith.mulf %31, %32 : vector<12x256xf32>
      %34 = arith.addf %28, %33 : vector<12x256xf32>
      %35 = vector.extract_strided_slice %14 {offsets = [0, 3], sizes = [12, 1], strides = [1, 1]} : vector<12x4xf32> to vector<12x1xf32>
      %36 = vector.extract_strided_slice %13 {offsets = [3, 0], sizes = [1, 256], strides = [1, 1]} : vector<4x256xf32> to vector<1x256xf32>
      %37 = vector.broadcast %35 : vector<12x1xf32> to vector<12x256xf32>
      %38 = vector.broadcast %36 : vector<1x256xf32> to vector<12x256xf32>
      %39 = arith.mulf %37, %38 : vector<12x256xf32>
      %40 = arith.addf %34, %39 : vector<12x256xf32>
      %41 = vector.broadcast %15 : vector<12x1xf32> to vector<12x256xf32>
      %42 = arith.addf %40, %41 : vector<12x256xf32>
      %43 = vector.extract_strided_slice %42 {offsets = [0, 0], sizes = [4, 256], strides = [1, 1]} : vector<12x256xf32> to vector<4x256xf32>
      %44 = vector.extract_strided_slice %42 {offsets = [4, 0], sizes = [4, 256], strides = [1, 1]} : vector<12x256xf32> to vector<4x256xf32>
      %45 = vector.extract_strided_slice %42 {offsets = [8, 0], sizes = [4, 256], strides = [1, 1]} : vector<12x256xf32> to vector<4x256xf32>
      %cst = arith.constant dense<0xFF800000> : vector<4xf32>
      %46 = vector.multi_reduction <maximumf>, %44, %cst [1] : vector<4x256xf32> to vector<4xf32>
      %47 = vector.shape_cast %46 : vector<4xf32> to vector<4x1xf32>
      %48 = vector.broadcast %47 : vector<4x1xf32> to vector<4x256xf32>
      %49 = arith.subf %44, %48 : vector<4x256xf32>
      %cst_15 = arith.constant 0.000000e+00 : f32
      %50 = vector.broadcast %cst_15 : f32 to vector<4x256xf32>
      %51 = arith.minimumf %49, %50 : vector<4x256xf32>
      %52 = math.exp %51 : vector<4x256xf32>
      %cst_16 = arith.constant dense<0.000000e+00> : vector<4xf32>
      %53 = vector.multi_reduction <add>, %52, %cst_16 [1] : vector<4x256xf32> to vector<4xf32>
      %54 = vector.shape_cast %53 : vector<4xf32> to vector<4x1xf32>
      %55 = tpu.reciprocal %54 {approx = true} : vector<4x1xf32> -> vector<4x1xf32>
      %56 = arith.mulf %54, %55 : vector<4x1xf32>
      %cst_17 = arith.constant 2.000000e+00 : f32
      %57 = vector.broadcast %cst_17 : f32 to vector<4x1xf32>
      %58 = arith.subf %57, %56 : vector<4x1xf32>
      %59 = arith.mulf %55, %58 : vector<4x1xf32>
      %60 = vector.broadcast %59 : vector<4x1xf32> to vector<4x256xf32>
      %61 = arith.mulf %52, %60 : vector<4x256xf32>
      %cst_18 = arith.constant dense<0xFF800000> : vector<256xf32>
      %62 = vector.multi_reduction <maximumf>, %45, %cst_18 [0] : vector<4x256xf32> to vector<256xf32>
      %63 = vector.shape_cast %62 : vector<256xf32> to vector<1x256xf32>
      %64 = vector.broadcast %63 : vector<1x256xf32> to vector<4x256xf32>
      %65 = arith.subf %45, %64 : vector<4x256xf32>
      %66 = math.exp %65 : vector<4x256xf32>
      %cst_19 = arith.constant dense<0.000000e+00> : vector<256xf32>
      %67 = vector.multi_reduction <add>, %66, %cst_19 [0] : vector<4x256xf32> to vector<256xf32>
      %68 = vector.shape_cast %67 : vector<256xf32> to vector<1x256xf32>
      %69 = tpu.reciprocal %68 {approx = true} : vector<1x256xf32> -> vector<1x256xf32>
      %70 = arith.mulf %68, %69 : vector<1x256xf32>
      %cst_20 = arith.constant 2.000000e+00 : f32
      %71 = vector.broadcast %cst_20 : f32 to vector<1x256xf32>
      %72 = arith.subf %71, %70 : vector<1x256xf32>
      %73 = arith.mulf %69, %72 : vector<1x256xf32>
      %74 = vector.broadcast %73 : vector<1x256xf32> to vector<4x256xf32>
      %75 = arith.mulf %66, %74 : vector<4x256xf32>
      %76 = vector.extract_strided_slice %61 {offsets = [0, 0], sizes = [1, 256], strides = [1, 1]} : vector<4x256xf32> to vector<1x256xf32>
      %77 = vector.broadcast %76 : vector<1x256xf32> to vector<4x256xf32>
      %78 = arith.mulf %43, %77 : vector<4x256xf32>
      %cst_21 = arith.constant dense<0.000000e+00> : vector<4xf32>
      %79 = vector.multi_reduction <add>, %78, %cst_21 [1] : vector<4x256xf32> to vector<4xf32>
      %80 = vector.shape_cast %79 : vector<4xf32> to vector<4x1xf32>
      %81 = vector.extract_strided_slice %75 {offsets = [0, 0], sizes = [1, 256], strides = [1, 1]} : vector<4x256xf32> to vector<1x256xf32>
      %82 = vector.broadcast %80 : vector<4x1xf32> to vector<4x256xf32>
      %83 = vector.broadcast %81 : vector<1x256xf32> to vector<4x256xf32>
      %84 = arith.mulf %82, %83 : vector<4x256xf32>
      %85 = vector.extract_strided_slice %61 {offsets = [1, 0], sizes = [1, 256], strides = [1, 1]} : vector<4x256xf32> to vector<1x256xf32>
      %86 = vector.broadcast %85 : vector<1x256xf32> to vector<4x256xf32>
      %87 = arith.mulf %43, %86 : vector<4x256xf32>
      %cst_22 = arith.constant dense<0.000000e+00> : vector<4xf32>
      %88 = vector.multi_reduction <add>, %87, %cst_22 [1] : vector<4x256xf32> to vector<4xf32>
      %89 = vector.shape_cast %88 : vector<4xf32> to vector<4x1xf32>
      %90 = vector.extract_strided_slice %75 {offsets = [1, 0], sizes = [1, 256], strides = [1, 1]} : vector<4x256xf32> to vector<1x256xf32>
      %91 = vector.broadcast %89 : vector<4x1xf32> to vector<4x256xf32>
      %92 = vector.broadcast %90 : vector<1x256xf32> to vector<4x256xf32>
      %93 = arith.mulf %91, %92 : vector<4x256xf32>
      %94 = arith.addf %84, %93 : vector<4x256xf32>
      %95 = vector.extract_strided_slice %61 {offsets = [2, 0], sizes = [1, 256], strides = [1, 1]} : vector<4x256xf32> to vector<1x256xf32>
      %96 = vector.broadcast %95 : vector<1x256xf32> to vector<4x256xf32>
      %97 = arith.mulf %43, %96 : vector<4x256xf32>
      %cst_23 = arith.constant dense<0.000000e+00> : vector<4xf32>
      %98 = vector.multi_reduction <add>, %97, %cst_23 [1] : vector<4x256xf32> to vector<4xf32>
      %99 = vector.shape_cast %98 : vector<4xf32> to vector<4x1xf32>
      %100 = vector.extract_strided_slice %75 {offsets = [2, 0], sizes = [1, 256], strides = [1, 1]} : vector<4x256xf32> to vector<1x256xf32>
      %101 = vector.broadcast %99 : vector<4x1xf32> to vector<4x256xf32>
      %102 = vector.broadcast %100 : vector<1x256xf32> to vector<4x256xf32>
      %103 = arith.mulf %101, %102 : vector<4x256xf32>
      %104 = arith.addf %94, %103 : vector<4x256xf32>
      %105 = vector.extract_strided_slice %61 {offsets = [3, 0], sizes = [1, 256], strides = [1, 1]} : vector<4x256xf32> to vector<1x256xf32>
      %106 = vector.broadcast %105 : vector<1x256xf32> to vector<4x256xf32>
      %107 = arith.mulf %43, %106 : vector<4x256xf32>
      %cst_24 = arith.constant dense<0.000000e+00> : vector<4xf32>
      %108 = vector.multi_reduction <add>, %107, %cst_24 [1] : vector<4x256xf32> to vector<4xf32>
      %109 = vector.shape_cast %108 : vector<4xf32> to vector<4x1xf32>
      %110 = vector.extract_strided_slice %75 {offsets = [3, 0], sizes = [1, 256], strides = [1, 1]} : vector<4x256xf32> to vector<1x256xf32>
      %111 = vector.broadcast %109 : vector<4x1xf32> to vector<4x256xf32>
      %112 = vector.broadcast %110 : vector<1x256xf32> to vector<4x256xf32>
      %113 = arith.mulf %111, %112 : vector<4x256xf32>
      %114 = arith.addf %104, %113 : vector<4x256xf32>
      %115 = vector.extract_strided_slice %16 {offsets = [0, 0], sizes = [4, 1], strides = [1, 1]} : vector<4x4xf32> to vector<4x1xf32>
      %116 = vector.extract_strided_slice %114 {offsets = [0, 0], sizes = [1, 256], strides = [1, 1]} : vector<4x256xf32> to vector<1x256xf32>
      %117 = vector.broadcast %115 : vector<4x1xf32> to vector<4x256xf32>
      %118 = vector.broadcast %116 : vector<1x256xf32> to vector<4x256xf32>
      %119 = arith.mulf %117, %118 : vector<4x256xf32>
      %120 = vector.extract_strided_slice %16 {offsets = [0, 1], sizes = [4, 1], strides = [1, 1]} : vector<4x4xf32> to vector<4x1xf32>
      %121 = vector.extract_strided_slice %114 {offsets = [1, 0], sizes = [1, 256], strides = [1, 1]} : vector<4x256xf32> to vector<1x256xf32>
      %122 = vector.broadcast %120 : vector<4x1xf32> to vector<4x256xf32>
      %123 = vector.broadcast %121 : vector<1x256xf32> to vector<4x256xf32>
      %124 = arith.mulf %122, %123 : vector<4x256xf32>
      %125 = arith.addf %119, %124 : vector<4x256xf32>
      %126 = vector.extract_strided_slice %16 {offsets = [0, 2], sizes = [4, 1], strides = [1, 1]} : vector<4x4xf32> to vector<4x1xf32>
      %127 = vector.extract_strided_slice %114 {offsets = [2, 0], sizes = [1, 256], strides = [1, 1]} : vector<4x256xf32> to vector<1x256xf32>
      %128 = vector.broadcast %126 : vector<4x1xf32> to vector<4x256xf32>
      %129 = vector.broadcast %127 : vector<1x256xf32> to vector<4x256xf32>
      %130 = arith.mulf %128, %129 : vector<4x256xf32>
      %131 = arith.addf %125, %130 : vector<4x256xf32>
      %132 = vector.extract_strided_slice %16 {offsets = [0, 3], sizes = [4, 1], strides = [1, 1]} : vector<4x4xf32> to vector<4x1xf32>
      %133 = vector.extract_strided_slice %114 {offsets = [3, 0], sizes = [1, 256], strides = [1, 1]} : vector<4x256xf32> to vector<1x256xf32>
      %134 = vector.broadcast %132 : vector<4x1xf32> to vector<4x256xf32>
      %135 = vector.broadcast %133 : vector<1x256xf32> to vector<4x256xf32>
      %136 = arith.mulf %134, %135 : vector<4x256xf32>
      %137 = arith.addf %131, %136 : vector<4x256xf32>
      %138 = vector.broadcast %17 : vector<4x1xf32> to vector<4x256xf32>
      %139 = arith.addf %137, %138 : vector<4x256xf32>
      %140 = arith.index_cast %arg1 : i32 to index
      %c0_25 = arith.constant 0 : index
      %c0_26 = arith.constant 0 : index
      %141 = vector.load %arg10[%140, %c0_25, %c0_26] : memref<2x4x256xf32, #tpu.memory_space<vmem>>, vector<1x4x256xf32>
      %142 = vector.shape_cast %141 : vector<1x4x256xf32> to vector<4x256xf32>
      %143 = vector.shape_cast %139 : vector<4x256xf32> to vector<1x4x256xf32>
      tpu.vector_store %arg10[%140, %c0_25, %c0_26], %143 {strides = array<i32>} : memref<2x4x256xf32, #tpu.memory_space<vmem>>, vector<1x4x256xf32>,
      %c0_27 = arith.constant 0 : index
      %c0_28 = arith.constant 0 : index
      %c0_29 = arith.constant 0 : index
      %144 = vector.load %arg11[%c0_27, %c0_28, %c0_29] : memref<2x4x1xf32, #tpu.memory_space<vmem>>, vector<1x4x1xf32>
      %145 = vector.shape_cast %144 : vector<1x4x1xf32> to vector<4x1xf32>
      %cst_30 = arith.constant dense<0.000000e+00> : vector<4xf32>
      %146 = vector.multi_reduction <add>, %139, %cst_30 [1] : vector<4x256xf32> to vector<4xf32>
      %147 = vector.shape_cast %146 : vector<4xf32> to vector<4x1xf32>
      %148 = arith.addf %145, %147 : vector<4x1xf32>
      %c0_31 = arith.constant 0 : index
      %c0_32 = arith.constant 0 : index
      %c0_33 = arith.constant 0 : index
      %149 = vector.load %arg11[%c0_31, %c0_32, %c0_33] : memref<2x4x1xf32, #tpu.memory_space<vmem>>, vector<1x4x1xf32>
      %150 = vector.shape_cast %149 : vector<1x4x1xf32> to vector<4x1xf32>
      %151 = vector.shape_cast %148 : vector<4x1xf32> to vector<1x4x1xf32>
      tpu.vector_store %arg11[%c0_31, %c0_32, %c0_33], %151 {strides = array<i32>} : memref<2x4x1xf32, #tpu.memory_space<vmem>>, vector<1x4x1xf32>,
    } else {
    }
    %c1_i32 = arith.constant 1 : i32
    %3 = arith.cmpi eq, %arg0, %c1_i32 : i32
    %4 = arith.extui %3 : i1 to i32
    %c0_i32_1 = arith.constant 0 : i32
    %5 = arith.cmpi ne, %4, %c0_i32_1 : i32
    scf.if %5 {
      %9 = arith.index_cast %arg1 : i32 to index
      %c0 = arith.constant 0 : index
      %c0_3 = arith.constant 0 : index
      %10 = vector.load %arg10[%9, %c0, %c0_3] : memref<2x4x256xf32, #tpu.memory_space<vmem>>, vector<1x4x256xf32>
      %11 = vector.shape_cast %10 : vector<1x4x256xf32> to vector<4x256xf32>
      %c0_4 = arith.constant 0 : index
      %c0_5 = arith.constant 0 : index
      %c0_6 = arith.constant 0 : index
      %12 = vector.load %arg11[%c0_4, %c0_5, %c0_6] : memref<2x4x1xf32, #tpu.memory_space<vmem>>, vector<1x4x1xf32>
      %13 = vector.shape_cast %12 : vector<1x4x1xf32> to vector<4x1xf32>
      %cst = arith.constant 0.001953125 : f32
      %14 = vector.broadcast %cst : f32 to vector<4x1xf32>
      %15 = arith.mulf %13, %14 : vector<4x1xf32>
      %16 = vector.broadcast %15 : vector<4x1xf32> to vector<4x256xf32>
      %17 = arith.subf %11, %16 : vector<4x256xf32>
      %c1 = arith.constant 1 : index
      %c0_7 = arith.constant 0 : index
      %c0_8 = arith.constant 0 : index
      %18 = vector.load %arg11[%c1, %c0_7, %c0_8] : memref<2x4x1xf32, #tpu.memory_space<vmem>>, vector<1x4x1xf32>
      %19 = vector.shape_cast %18 : vector<1x4x1xf32> to vector<4x1xf32>
      %20 = arith.mulf %17, %17 : vector<4x256xf32>
      %cst_9 = arith.constant dense<0.000000e+00> : vector<4xf32>
      %21 = vector.multi_reduction <add>, %20, %cst_9 [1] : vector<4x256xf32> to vector<4xf32>
      %22 = vector.shape_cast %21 : vector<4xf32> to vector<4x1xf32>
      %23 = arith.addf %19, %22 : vector<4x1xf32>
      %c1_10 = arith.constant 1 : index
      %c0_11 = arith.constant 0 : index
      %c0_12 = arith.constant 0 : index
      %24 = vector.load %arg11[%c1_10, %c0_11, %c0_12] : memref<2x4x1xf32, #tpu.memory_space<vmem>>, vector<1x4x1xf32>
      %25 = vector.shape_cast %24 : vector<1x4x1xf32> to vector<4x1xf32>
      %26 = vector.shape_cast %23 : vector<4x1xf32> to vector<1x4x1xf32>
      tpu.vector_store %arg11[%c1_10, %c0_11, %c0_12], %26 {strides = array<i32>} : memref<2x4x1xf32, #tpu.memory_space<vmem>>, vector<1x4x1xf32>,
    } else {
    }
    %c2_i32 = arith.constant 2 : i32
    %6 = arith.cmpi eq, %arg0, %c2_i32 : i32
    %7 = arith.extui %6 : i1 to i32
    %c0_i32_2 = arith.constant 0 : i32
    %8 = arith.cmpi ne, %7, %c0_i32_2 : i32
    scf.if %8 {
      %c0 = arith.constant 0 : index
      %c0_3 = arith.constant 0 : index
      %c0_4 = arith.constant 0 : index
      %9 = vector.load %arg11[%c0, %c0_3, %c0_4] : memref<2x4x1xf32, #tpu.memory_space<vmem>>, vector<1x4x1xf32>
      %10 = vector.shape_cast %9 : vector<1x4x1xf32> to vector<4x1xf32>
      %cst = arith.constant 0.001953125 : f32
      %11 = vector.broadcast %cst : f32 to vector<4x1xf32>
      %12 = arith.mulf %10, %11 : vector<4x1xf32>
      %c1 = arith.constant 1 : index
      %c0_5 = arith.constant 0 : index
      %c0_6 = arith.constant 0 : index
      %13 = vector.load %arg11[%c1, %c0_5, %c0_6] : memref<2x4x1xf32, #tpu.memory_space<vmem>>, vector<1x4x1xf32>
      %14 = vector.shape_cast %13 : vector<1x4x1xf32> to vector<4x1xf32>
      %cst_7 = arith.constant 0.001953125 : f32
      %15 = vector.broadcast %cst_7 : f32 to vector<4x1xf32>
      %16 = arith.mulf %14, %15 : vector<4x1xf32>
      %cst_8 = arith.constant 9.99999974E-6 : f32
      %17 = vector.broadcast %cst_8 : f32 to vector<4x1xf32>
      %18 = arith.addf %16, %17 : vector<4x1xf32>
      %19 = math.rsqrt %18 : vector<4x1xf32>
      %c0_9 = arith.constant 0 : index
      %c0_10 = arith.constant 0 : index
      %20 = vector.load %arg7[%c0_9, %c0_10] : memref<4x1xf32, #tpu.memory_space<vmem>>, vector<4x1xf32>
      %21 = arith.mulf %20, %19 : vector<4x1xf32>
      %c0_11 = arith.constant 0 : index
      %c0_12 = arith.constant 0 : index
      %22 = vector.load %arg8[%c0_11, %c0_12] : memref<4x1xf32, #tpu.memory_space<vmem>>, vector<4x1xf32>
      %23 = arith.mulf %12, %21 : vector<4x1xf32>
      %24 = arith.subf %22, %23 : vector<4x1xf32>
      %25 = arith.index_cast %arg1 : i32 to index
      %c0_13 = arith.constant 0 : index
      %c0_14 = arith.constant 0 : index
      %26 = vector.load %arg10[%25, %c0_13, %c0_14] : memref<2x4x256xf32, #tpu.memory_space<vmem>>, vector<1x4x256xf32>
      %27 = vector.shape_cast %26 : vector<1x4x256xf32> to vector<4x256xf32>
      %28 = vector.broadcast %21 : vector<4x1xf32> to vector<4x256xf32>
      %29 = arith.mulf %27, %28 : vector<4x256xf32>
      %30 = vector.broadcast %24 : vector<4x1xf32> to vector<4x256xf32>
      %31 = arith.addf %29, %30 : vector<4x256xf32>
      %cst_15 = arith.constant 0.000000e+00 : f32
      %32 = vector.broadcast %cst_15 : f32 to vector<4x256xf32>
      %33 = arith.maximumf %31, %32 : vector<4x256xf32>
      %c0_16 = arith.constant 0 : index
      %c0_17 = arith.constant 0 : index
      %c0_18 = arith.constant 0 : index
      %34 = vector.load %arg2[%c0_16, %c0_17, %c0_18] : memref<1x4x256xf32, #tpu.memory_space<vmem>>, vector<1x4x256xf32>
      %35 = vector.shape_cast %34 : vector<1x4x256xf32> to vector<4x256xf32>
      %36 = arith.addf %33, %35 : vector<4x256xf32>
      %c0_19 = arith.constant 0 : index
      %c0_20 = arith.constant 0 : index
      %c0_21 = arith.constant 0 : index
      %37 = vector.load %arg9[%c0_19, %c0_20, %c0_21] : memref<1x4x256xf32, #tpu.memory_space<vmem>>, vector<1x4x256xf32>
      %38 = vector.shape_cast %37 : vector<1x4x256xf32> to vector<4x256xf32>
      %39 = vector.shape_cast %36 : vector<4x256xf32> to vector<1x4x256xf32>
      tpu.vector_store %arg9[%c0_19, %c0_20, %c0_21], %39 {strides = array<i32>} : memref<1x4x256xf32, #tpu.memory_space<vmem>>, vector<1x4x256xf32>,
    } else {
    }
    return
  }
  func.func @transform_0(%arg0: i32, %arg1: i32) -> (i32, i32, i32) {
    %c1_i32 = arith.constant 1 : i32
    %0 = arith.cmpi eq, %arg0, %c1_i32 : i32
    %c0_i32 = arith.constant 0 : i32
    %1 = arith.select %0, %c0_i32, %arg1 : i32
    %c0_i32_0 = arith.constant 0 : i32
    %c0_i32_1 = arith.constant 0 : i32
    %c0_i32_2 = arith.constant 0 : i32
    return %1, %c0_i32_0, %c0_i32_1 : i32, i32, i32
  }
  func.func @transform_1(%arg0: i32, %arg1: i32) -> (i32, i32) {
    %c0_i32 = arith.constant 0 : i32
    %c0_i32_0 = arith.constant 0 : i32
    %c0_i32_1 = arith.constant 0 : i32
    return %c0_i32, %c0_i32_0 : i32, i32
  }
  func.func @transform_2(%arg0: i32, %arg1: i32) -> (i32, i32) {
    %c0_i32 = arith.constant 0 : i32
    %c0_i32_0 = arith.constant 0 : i32
    %c0_i32_1 = arith.constant 0 : i32
    return %c0_i32, %c0_i32_0 : i32, i32
  }
  func.func @transform_3(%arg0: i32, %arg1: i32) -> (i32, i32) {
    %c0_i32 = arith.constant 0 : i32
    %c0_i32_0 = arith.constant 0 : i32
    %c0_i32_1 = arith.constant 0 : i32
    return %c0_i32, %c0_i32_0 : i32, i32
  }
  func.func @transform_4(%arg0: i32, %arg1: i32) -> (i32, i32) {
    %c0_i32 = arith.constant 0 : i32
    %c0_i32_0 = arith.constant 0 : i32
    %c0_i32_1 = arith.constant 0 : i32
    return %c0_i32, %c0_i32_0 : i32, i32
  }
  func.func @transform_5(%arg0: i32, %arg1: i32) -> (i32, i32) {
    %c0_i32 = arith.constant 0 : i32
    %c0_i32_0 = arith.constant 0 : i32
    %c0_i32_1 = arith.constant 0 : i32
    return %c0_i32, %c0_i32_0 : i32, i32
  }
  func.func @transform_6(%arg0: i32, %arg1: i32) -> (i32, i32) {
    %c0_i32 = arith.constant 0 : i32
    %c0_i32_0 = arith.constant 0 : i32
    %c0_i32_1 = arith.constant 0 : i32
    return %c0_i32, %c0_i32_0 : i32, i32
  }
  func.func @transform_7(%arg0: i32, %arg1: i32) -> (i32, i32, i32) {
    %c2_i32 = arith.constant 2 : i32
    %0 = arith.cmpi eq, %arg0, %c2_i32 : i32
    %c0_i32 = arith.constant 0 : i32
    %1 = arith.select %0, %arg1, %c0_i32 : i32
    %c0_i32_0 = arith.constant 0 : i32
    %c0_i32_1 = arith.constant 0 : i32
    %c0_i32_2 = arith.constant 0 : i32
    return %1, %c0_i32_0, %c0_i32_1 : i32, i32, i32
  }
}

</mosaic_0001>

<bundles_post_ra>
// kernel: tpu_custom_call.1
= control target key start
LH: loop header
LB: loop body
LE: loop exit
PB: predicated region body
PF: predicated region fallthrough
CT: control target
= control target key end

     0   :  { %s1530_s0 = inlined_call_operand.vmem [shape: f32[2,4,256], index: 0, kind: input, shape index: {}]   ;;  %s1531_s1 = inlined_call_operand.vmem [shape: f32[12,4], index: 1, kind: input, shape index: {}]   ;;  %s1532_s2 = inlined_call_operand.vmem [shape: f32[12,1], index: 2, kind: input, shape index: {}]   ;;  %s1533_s3 = inlined_call_operand.vmem [shape: f32[4,4], index: 3, kind: input, shape index: {}]   ;;  %s1534_s4 = inlined_call_operand.vmem [shape: f32[4,1], index: 4, kind: input, shape index: {}]   ;;  %s1535_s5 = inlined_call_operand.vmem [shape: f32[4,1], index: 5, kind: input, shape index: {}]   ;;  %s1536_s6 = inlined_call_operand.vmem [shape: f32[4,1], index: 6, kind: input, shape index: {}]   ;;  %s1537_s7 = inlined_call_operand.hbm [shape: f32[2,4,256], index: 7, kind: output, shape index: {}]  }
   0x1   :  { %1538 = sst [smem:[#allocation7_spill]] %s1530_s0 }
   0x2   :  { %12 = vsyncpa [#allocation5], 0 }
   0x3   :  { %14 = vsyncpa [#allocation5 + $0x1], 0  ;;  %s1207_s24 = smov 0   ;;  %s1209_s25 = smov 0  }
   0x4   :  { %s1211_s26 = smov 0   ;;  %s1213_s27 = smov 0  }
   0x5   :  { %s1215_s28 = smov 0   ;;  %s1217_s29 = smov 0  }
   0x6   :  { %s1219_s30 = smov 0   ;;  %s1221_s8 = smov 0  }
   0x7 LB: > { %s920_s9 = sadd.s32 4294967295, %s1155_s8   ;;  %s29_s10 = sadd.s32 1, %s1147_s29  ;;  %s1155_s8 = sphi %s1221_s8, %s20_s8   ;;  %s1151_s30 = sphi %s1219_s30, %s1548_s30   ;;  %s1147_s29 = sphi %s1217_s29, %s1547_s29   ;;  %s1143_s28 = sphi %s1215_s28, %s1546_s28   ;;  %s1139_s27 = sphi %s1213_s27, %s1545_s27   ;;  %s1135_s26 = sphi %s1211_s26, %s1544_s26   ;;  %s1131_s25 = sphi %s1209_s25, %s1543_s25   ;;  %s1127_s24 = sphi %s1207_s24, %s1542_s24  }
   0x8   : > { %s32_s11 = sadd.s32 1, %s1151_s30  ;;  %p30_p0 = scmp.ge.s32.totalorder %s29_s10, 2 }
   0x9   : > { %p192_p1 = scmp.eq.s32.totalorder %s1151_s30, 2  ;;  %s921_s12 = sadd.s32 4294967294, %s1155_s8  }
   0xa   : > { %p209_p2 = scmp.ne.s32.totalorder %s1135_s26, %s1131_s25  ;;  %s1550_s10 = smov (%p30_p0, %s29_s10), 0 }
   0xb   : > { %s1552_s11 = smov (!%p30_p0, %s32_s11), %s1151_s30  ;;  %p210_p4 = scmp.eq.s32.totalorder %s920_s9, 5 }
   0xc   : > { %s193_s13 = scalar_select %p192_p1, %s1147_s29, 0 }
   0xd   : > { %p34_p3 = scmp.ge.s32.totalorder %s1552_s11, 3  ;;  %p215_p5 = scmp.ne.s32.totalorder %s1131_s25, %s1127_s24 }
   0xe   : > { %p216_p6 = scmp.eq.s32.totalorder %s921_s12, 5  ;;  %p1262_p7 = por %p210_p4, %p209_p2 }
   0xf   : > { %s1554_s11 = smov (%p34_p3, %s1552_s11), 0  ;;  %p924_p10 = scmp.ge.s32.totalorder %s1155_s8, 1 }
  0x10   : > { %p1266_p8 = por %p216_p6, %p215_p5  ;;  %p194_p9 = scmp.eq.s32.totalorder %s1554_s11, 2 }
  0x11   : > { %p264_p11 = scmp.lt.s32.totalorder %s1155_s8, 7  ;;  %s199_s18 = sadd.s32 1, %s1135_s26 }
  0x12   : > { %s195_s16 = scalar_select %p194_p9, %s1550_s10, 0 }
  0x13   : > { %p265_p12 = pnand %p924_p10, %p264_p11 }
  0x14   : > { %s196_s17 = ssub.s32 %s193_s13, %s195_s16  ;;  %s295_s20 = sand.u32 (!%p265_p12), 1, %s1131_s25  }
  0x15   : > { %p197_p13 = scmp.eq.s32.totalorder %s196_s17, 0  ;;  %268 = sbr.rel (%p265_p12) target bundleno = 1320 (0x528), region = 48 }
  0x16   : > { %p298_p0 = scmp.eq.s32.totalorder (!%p265_p12), %s1143_s28, 1  ;;  %s1282_s21 = sshll.u32 (!%p265_p12), %s295_s20, 3 }
  0x17   : > { %s1276_s19 = scalar_select %p197_p13, %s1135_s26, %s199_s18  }
  0x18   : > { %s1541_s0 = sld [smem:[#allocation7_spill]] (!%p265_p12)  ;;  %s297_s16 = scalar_lea.vmem (!%p265_p12), [#allocation4], %s1282_s21 }
  0x19   : > { %p928_p2 = scmp.ne.s32.totalorder (!%p265_p12), %s1143_s28, 0 }
  0x1c   : > { %s299_s22 = scalar_select %p298_p0, 0, %s1139_s27 }
  0x1d   : > { %312 = sbr.rel (%p928_p2) target bundleno = 836 (0x344), region = 52  ;;  %p929_p3 = scmp.ne.s32.totalorder (!%p928_p2), %s1139_s27, 0 }
  0x1e   : > { %p300_p1 = scmp.lt.s32.totalorder %s299_s22, 1 }
  0x20   : > { %s1556_s22 = smov (!%p300_p1, %s299_s22), 1 }
  0x21   : > { %s943_s23 = sshll.u32 %s1556_s22, 3 }
  0x22   : > { %s1288_s13 = scalar_lea.vmem %s1541_s0, %s943_s23 }
  0x24   : > { %316 = sbr.rel (%p929_p3) target bundleno = 43 (0x2b), region = 56  ;;  %vm317_vm0 = vcmask (!%p929_p3), 3072   ;;  %v1157_v0 = vmov (!%p929_p3), 0.0  }
  0x25   : > { %318 = vst.msk [vmem:[#allocation3] sm:$0xf] (!%p929_p3), %vm317_vm0, %v1157_v0  ;;  %319 = vst.msk [vmem:[#allocation3 + $0x4] sm:$0xf] (!%p929_p3), %vm317_vm0, %v1157_v0 }
  0x2b PF: > { %v321_v1 = vld [vmem:[%s1531_s1] sm:$0xff]  ;;  %v1158_v2 = vmov 0   ;;  %v1159_v3 = vmov 2   ;;  %v1160_v4 = vmov 1   ;;  %v1161_v5 = vmov 3   ;;  %s944_s17 = sshll.u32 %s1139_s27, 3 }
  0x2c   : > { %1028 = vset.pattern.permute.xlu0 %v1158_v2  ;;  %1030 = vset.pattern.permute.xlu1 %v1159_v3  ;;  %v323_v6 = vld [vmem:[%s1532_s2] sm:$0xff]  ;;  %v1309_v7 = vld [vmem:[%s1531_s1 + $0x8] sm:$0xf]  ;;  %v338_v8 = vlaneseq  ;;  %vm476_vm1 = vcmask 1047556   ;;  %vm501_vm2 = vcmask 1043456   ;;  %s728_s18 = scalar_lea.vmem [#allocation2], %s944_s17 }
  0x2d   : > { %329 = vperm.xlu0 %1028, %v321_v1   ;;  %395 = vperm.xlu1 %1030, %v321_v1   ;;  %v320_v14 = vld [vmem:[%s1288_s13] sm:$0xff]  ;;  %vm737_vm3 = vcmask 3072  }
  0x2e   : > { %v339_v9 = vshrl.u32 %v338_v8, 7  ;;  %v1382_v59 = vld [vmem:[%s1533_s3] sm:$0xf] }
  0x30   : > { %v1313_v10 = vsub.s32 0, %v339_v9  ;;  %v1315_v11 = vsub.s32 4, %v339_v9  ;;  %v1317_v12 = vsub.s32 1, %v339_v9  ;;  %v1319_v13 = vsub.s32 5, %v339_v9 }
  0x31   : > { %1029 = vset.pattern.permute.xlu0 %v1160_v4  ;;  %1031 = vset.pattern.permute.xlu1 %v1161_v5  ;;  %v1322_v15 = vsub.s32 2, %v339_v9  ;;  %v1324_v16 = vsub.s32 6, %v339_v9  ;;  %v1326_v17 = vsub.s32 3, %v339_v9  ;;  %v1328_v18 = vsub.s32 7, %v339_v9 }
  0x32   : > { %361 = vperm.xlu0 %1029, %v321_v1   ;;  %429 = vperm.xlu1 %1031, %v321_v1   ;;  %v341_v19 = vrot.slane %v320_v14, %v1313_v10  ;;  %v345_v20 = vrot.slane %v320_v14, %v1315_v11  ;;  %v371_v21 = vrot.slane %v320_v14, %v1317_v12 }
  0x33   : > { %v375_v22 = vrot.slane %v320_v14, %v1319_v13  ;;  %v405_v23 = vrot.slane %v320_v14, %v1322_v15  ;;  %v409_v24 = vrot.slane %v320_v14, %v1324_v16  ;;  %v439_v27 = vrot.slane %v320_v14, %v1326_v17 }
  0x34   : > { %v443_v28 = vrot.slane %v320_v14, %v1328_v18  ;;  %v1339_v29 = vrot.slane %v341_v19, %v1313_v10  ;;  %v1342_v30 = vrot.slane %v345_v20, %v1313_v10  ;;  %v1345_v31 = vrot.slane %v371_v21, %v1317_v12  ;;  %v324_v21 = vld [vmem:[%s1532_s2 + $0x8] sm:$0xf] }
  0x35   : > { %v1348_v32 = vrot.slane %v375_v22, %v1317_v12  ;;  %v1351_v33 = vrot.slane %v405_v23, %v1322_v15  ;;  %v1354_v34 = vrot.slane %v409_v24, %v1322_v15  ;;  %v1357_v35 = vrot.slane %v439_v27, %v1326_v17 }
  0x36   : > { %1032 = vset.pattern.permute.xlu1 %v1158_v2  ;;  %1033 = vset.pattern.permute.xlu0 %v1158_v2  ;;  %v1360_v36 = vrot.slane %v443_v28, %v1326_v17 }
  0x37   : > { %464 = vperm.xlu1 %1032, %v323_v6  }
  0x3b   : > { %1034 = vset.pattern.permute.xlu1 %v1160_v4 }
  0x3c   : > { %365 = vperm.xlu1 %1034, %v1309_v7  }
  0x40   : > { %1035 = vset.pattern.permute.xlu1 %v1159_v3 }
  0xac   : > { %v330_v25 = vpop.permute.xlu0 %329  ;;  %v396_v26 = vpop.permute.xlu1 %395 }
  0xad   : > { %v356_v39 = vmul.f32 %v1339_v29, %v330_v25  ;;  %v357_v40 = vmul.f32 %v1342_v30, %v330_v25  ;;  %v420_v43 = vmul.f32 %v1351_v33, %v396_v26  ;;  %v421_v44 = vmul.f32 %v1354_v34, %v396_v26 }
  0xb1   : > { %v362_v37 = vpop.permute.xlu0 %361  ;;  %v430_v38 = vpop.permute.xlu1 %429 }
  0xb2   : > { %v386_v41 = vmul.f32 %v1345_v31, %v362_v37  ;;  %v387_v42 = vmul.f32 %v1348_v32, %v362_v37  ;;  %v454_v47 = vmul.f32 %v1357_v35, %v430_v38  ;;  %v455_v48 = vmul.f32 %v1360_v36, %v430_v38 }
  0xb4   : > { %v390_v45 = vadd.f32 %v386_v41, %v356_v39  ;;  %v391_v46 = vadd.f32 %v387_v42, %v357_v40 }
  0xb6   : > { %v424_v49 = vadd.f32 %v420_v43, %v390_v45  ;;  %v425_v50 = vadd.f32 %v421_v44, %v391_v46  ;;  %v465_v51 = vpop.permute.xlu1 %464 }
  0xb8   : > { %v458_v52 = vadd.f32 %v454_v47, %v424_v49  ;;  %v459_v53 = vadd.f32 %v455_v48, %v425_v50 }
  0xba   : > { %v1370_v54 = vadd.f32 %v465_v51, %v458_v52  ;;  %v1372_v55 = vadd.f32 %v465_v51, %v459_v53 }
  0xbc   : > { %v477_v56 = vsel %vm476_vm1, %v1370_v54, -inf  ;;  %v478_v57 = vsel %vm476_vm1, %v1372_v55, -inf }
  0xbd   : > { %v479_v58 = vmax.f32 %v477_v56, %v478_v57 }
  0xbf   : > { %480 = vmax.xlane.f32.xlu0 %v479_v58 }
  0xd5   : > { %334 = vperm.xlu0 %1033, %v1309_v7  }
  0xd9   : > { %654 = vperm.xlu0 %1033, %v1382_v59  }
  0xdd   : > { %1040 = vset.pattern.permute.xlu0 %v1161_v5 }
 0x14c   : > { %v481_v60 = vpop.xlane.xlu0 %480 }
 0x14d   : > { %v482_v61 = vsub.f32 %v1370_v54, %v481_v60  ;;  %v483_v62 = vsub.f32 %v1372_v55, %v481_v60 }
 0x14f   : > { %v484_v63 = vmin.f32 %v482_v61, 0.0  ;;  %v485_v0 = vmin.f32 %v483_v62, 0.0 }
 0x151   : > { %v486_v1 = vmul.f32 1.442695, %v484_v63  ;;  %v488_v6 = vmul.f32 1.442695, %v485_v0 }
 0x153   : > { %1043 = vpow2.f32 %v486_v1 }
 0x154   : > { %1045 = vpow2.f32 %v488_v6  ;;  %v335_v63 = vpop.permute.xlu0 %334 }
 0x15d   : > { %v1044_v8 = vpop.eup %1043 }
 0x15e   : > { %v1046_v9 = vpop.eup %1045  ;;  %v490_v14 = vsel %vm476_vm1, %v1044_v8, 0.0 }
 0x15f   : > { %v491_v19 = vsel %vm476_vm1, %v1046_v9, 0.0 }
 0x160   : > { %v492_v20 = vadd.f32 %v491_v19, %v490_v14 }
 0x162   : > { %493 = vadd.xlane.f32.xlu1 %v492_v20 }
 0x173   : > { %399 = vperm.xlu1 %1035, %v1309_v7  }
 0x177   : > { %1036 = vset.pattern.permute.xlu1 %v1161_v5  ;;  %v366_v5 = vpop.permute.xlu1 %365 }
 0x178   : > { %433 = vperm.xlu1 %1036, %v1309_v7   ;;  %v388_v0 = vmul.f32 %v1345_v31, %v366_v5  ;;  %v389_v1 = vmul.f32 %v1348_v32, %v366_v5 }
 0x17c   : > { %1037 = vset.pattern.permute.xlu1 %v1158_v2 }
 0x17d   : > { %469 = vperm.xlu1 %1037, %v324_v21  }
 0x181   : > { %1038 = vset.pattern.permute.xlu1 %v1160_v4 }
 0x182   : > { %668 = vperm.xlu1 %1038, %v1382_v59  }
 0x186   : > { %1039 = vset.pattern.permute.xlu1 %v1159_v3 }
 0x187   : > { %684 = vperm.xlu1 %1039, %v1382_v59  }
 0x18b   : > { %1041 = vset.pattern.permute.xlu1 %v1158_v2 }
 0x1ef   : > { %v494_v22 = vpop.xlane.xlu1 %493 }
 0x1f0   : > { %1047 = vrcp.f32 %v494_v22 }
 0x1f3   : > { %v400_v62 = vpop.permute.xlu1 %399 }
 0x1f7   : > { %v434_v6 = vpop.permute.xlu1 %433 }
 0x1f8   : > { %v456_v31 = vmul.f32 %v1357_v35, %v434_v6  ;;  %v457_v32 = vmul.f32 %v1360_v36, %v434_v6 }
 0x1fa   : > { %v1048_v7 = vpop.eup %1047 }
 0x1fb   : > { %v496_v23 = vmul.f32 %v1048_v7, %v494_v22 }
 0x1fc   : > { %v470_v20 = vpop.permute.xlu1 %469 }
 0x1fd   : > { %v497_v24 = vsub.f32 2.0, %v496_v23 }
 0x1ff   : > { %v498_v25 = vmul.f32 %v1048_v7, %v497_v24 }
 0x201   : > { %v499_v26 = vmul.f32 %v1044_v8, %v498_v25  ;;  %v500_v27 = vmul.f32 %v1046_v9, %v498_v25  ;;  %v422_v8 = vmul.f32 %v1351_v33, %v400_v62  ;;  %v423_v9 = vmul.f32 %v1354_v34, %v400_v62 }
 0x203   : > { %v574_v28 = vrot.slane %v499_v26, %v1319_v13  ;;  %v578_v4 = vrot.slane %v500_v27, %v1319_v13  ;;  %v549_v37 = vrot.slane %v499_v26, %v1315_v11  ;;  %v553_v3 = vrot.slane %v500_v27, %v1315_v11 }
 0x204   : > { %v601_v38 = vrot.slane %v499_v26, %v1324_v16  ;;  %v605_v39 = vrot.slane %v500_v27, %v1324_v16  ;;  %v628_v51 = vrot.slane %v499_v26, %v1328_v18  ;;  %v632_v52 = vrot.slane %v500_v27, %v1328_v18 }
 0x205   : > { %v579_v40 = vmul.f32 %v574_v28, %v1370_v54  ;;  %v580_v41 = vmul.f32 %v578_v4, %v1372_v55  ;;  %v554_v42 = vmul.f32 %v549_v37, %v1370_v54  ;;  %v555_v43 = vmul.f32 %v553_v3, %v1372_v55 }
 0x206   : > { %v606_v44 = vmul.f32 %v601_v38, %v1370_v54  ;;  %v607_v13 = vmul.f32 %v605_v39, %v1372_v55  ;;  %v633_v53 = vmul.f32 %v628_v51, %v1370_v54  ;;  %v634_v56 = vmul.f32 %v632_v52, %v1372_v55  ;;  %v326_v55 = vld [vmem:[%s1534_s4] sm:$0xf] }
 0x207   : > { %v581_v45 = vsel %vm501_vm2, %v579_v40, 0.0  ;;  %v582_v11 = vsel %vm501_vm2, %v580_v41, 0.0  ;;  %v556_v46 = vsel %vm501_vm2, %v554_v42, 0.0  ;;  %v557_v16 = vsel %vm501_vm2, %v555_v43, 0.0 }
 0x208   : > { %v583_v47 = vadd.f32 %v582_v11, %v581_v45  ;;  %v558_v48 = vadd.f32 %v557_v16, %v556_v46  ;;  %v608_v49 = vsel %vm501_vm2, %v606_v44, 0.0  ;;  %v609_v50 = vsel %vm501_vm2, %v607_v13, 0.0 }
 0x209   : > { %v610_v57 = vadd.f32 %v609_v50, %v608_v49  ;;  %v635_v58 = vsel %vm501_vm2, %v633_v53, 0.0  ;;  %v636_v60 = vsel %vm501_vm2, %v634_v56, 0.0  ;;  %v358_v18 = vmul.f32 %v1339_v29, %v335_v63 }
 0x20a   : > { %584 = vadd.xlane.f32.xlu0 %v583_v47  ;;  %559 = vadd.xlane.f32.xlu1 %v558_v48  ;;  %v637_v61 = vadd.f32 %v636_v60, %v635_v58  ;;  %v359_v54 = vmul.f32 %v1342_v30, %v335_v63  ;;  %v669_v63 = vpop.permute.xlu1 %668 }
 0x20b   : > { %v392_v14 = vadd.f32 %v388_v0, %v358_v18 }
 0x20c   : > { %v393_v29 = vadd.f32 %v389_v1, %v359_v54  ;;  %v655_v1 = vpop.permute.xlu0 %654 }
 0x20d   : > { %v426_v30 = vadd.f32 %v422_v8, %v392_v14 }
 0x20e   : > { %611 = vadd.xlane.f32.xlu1 %v610_v57  ;;  %v427_v19 = vadd.f32 %v423_v9, %v393_v29  ;;  %v685_v54 = vpop.permute.xlu1 %684 }
 0x210   : > { %v461_v21 = vadd.f32 %v457_v32, %v427_v19 }
 0x212   : > { %638 = vadd.xlane.f32.xlu1 %v637_v61  ;;  %v475_v22 = vadd.f32 %v470_v20, %v461_v21 }
 0x214   : > { %v509_v34 = vsel %vm501_vm2, %v475_v22, -inf }
 0x215   : > { %v510_v23 = vrot.slane %v509_v34, 4 }
 0x217   : > { %v511_v24 = vmax.f32 %v509_v34, %v510_v23 }
 0x219   : > { %v512_v26 = vrot.slane %v511_v24, 2 }
 0x21b   : > { %v513_v27 = vmax.f32 %v511_v24, %v512_v26 }
 0x21d   : > { %v514_v28 = vrot.slane %v513_v27, 1 }
 0x21f   : > { %v515_v37 = vmax.f32 %v513_v27, %v514_v28 }
 0x220   : > { %700 = vperm.xlu0 %1040, %v1382_v59   ;;  %v460_v59 = vadd.f32 %v456_v31, %v426_v30 }
 0x221   : > { %v517_v38 = vsub.f32 %v475_v22, %v515_v37 }
 0x222   : > { %v474_v5 = vadd.f32 %v470_v20, %v460_v59 }
 0x223   : > { %717 = vperm.xlu1 %1041, %v326_v55   ;;  %v520_v40 = vmul.f32 1.442695, %v517_v38 }
 0x224   : > { %1042 = vset.pattern.permute.xlu0 %v1158_v2  ;;  %v502_v33 = vsel %vm501_vm2, %v474_v5, -inf }
 0x225   : > { %v503_v7 = vrot.slane %v502_v33, 4 }
 0x227   : > { %v504_v35 = vmax.f32 %v502_v33, %v503_v7 }
 0x229   : > { %v505_v25 = vrot.slane %v504_v35, 2 }
 0x22b   : > { %v506_v36 = vmax.f32 %v504_v35, %v505_v25 }
 0x22d   : > { %v507_v2 = vrot.slane %v506_v36, 1 }
 0x22f   : > { %v508_v4 = vmax.f32 %v506_v36, %v507_v2 }
 0x231   : > { %v516_v3 = vsub.f32 %v474_v5, %v508_v4 }
 0x233   : > { %v518_v39 = vmul.f32 1.442695, %v516_v3 }
 0x235   : > { %1049 = vpow2.f32 %v518_v39 }
 0x236   : > { %1051 = vpow2.f32 %v520_v40 }
 0x23f   : > { %v1050_v41 = vpop.eup %1049 }
 0x240   : > { %v1052_v42 = vpop.eup %1051  ;;  %v522_v43 = vsel %vm501_vm2, %v1050_v41, 0.0 }
 0x241   : > { %v529_v44 = vsel %vm501_vm2, %v1052_v42, 0.0  ;;  %v523_v13 = vrot.slane %v522_v43, 4 }
 0x242   : > { %v530_v45 = vrot.slane %v529_v44, 4 }
 0x243   : > { %v524_v11 = vadd.f32 %v523_v13, %v522_v43 }
 0x244   : > { %v531_v46 = vadd.f32 %v530_v45, %v529_v44 }
 0x245   : > { %v525_v16 = vrot.slane %v524_v11, 2 }
 0x246   : > { %v532_v47 = vrot.slane %v531_v46, 2 }
 0x247   : > { %v526_v48 = vadd.f32 %v525_v16, %v524_v11 }
 0x248   : > { %v533_v49 = vadd.f32 %v532_v47, %v531_v46 }
 0x249   : > { %v527_v50 = vrot.slane %v526_v48, 1 }
 0x24a   : > { %v534_v51 = vrot.slane %v533_v49, 1 }
 0x24b   : > { %v528_v52 = vadd.f32 %v527_v50, %v526_v48 }
 0x24c   : > { %v535_v53 = vadd.f32 %v534_v51, %v533_v49 }
 0x24d   : > { %1053 = vrcp.f32 %v528_v52 }
 0x24e   : > { %1055 = vrcp.f32 %v535_v53 }
 0x257   : > { %v1054_v56 = vpop.eup %1053 }
 0x258   : > { %v1056_v57 = vpop.eup %1055  ;;  %v538_v58 = vmul.f32 %v1054_v56, %v528_v52 }
 0x259   : > { %v539_v60 = vmul.f32 %v1056_v57, %v535_v53 }
 0x25a   : > { %v540_v61 = vsub.f32 2.0, %v538_v58 }
 0x25b   : > { %v541_v62 = vsub.f32 2.0, %v539_v60 }
 0x25c   : > { %v542_v0 = vmul.f32 %v1054_v56, %v540_v61 }
 0x25d   : > { %v543_v18 = vmul.f32 %v1056_v57, %v541_v62  ;;  %v730_v62 = vld [vmem:[#allocation3] sm:$0xf] }
 0x25e   : > { %v544_v6 = vmul.f32 %v1050_v41, %v542_v0 }
 0x25f   : > { %v545_v55 = vmul.f32 %v1052_v42, %v543_v18 }
 0x260   : > { %v564_v14 = vrot.slane %v544_v6, %v1313_v10  ;;  %v589_v29 = vrot.slane %v544_v6, %v1317_v12  ;;  %v616_v30 = vrot.slane %v544_v6, %v1322_v15  ;;  %v643_v35 = vrot.slane %v544_v6, %v1326_v17 }
 0x261   : > { %v568_v31 = vrot.slane %v545_v55, %v1313_v10  ;;  %v593_v32 = vrot.slane %v545_v55, %v1317_v12  ;;  %v620_v19 = vrot.slane %v545_v55, %v1322_v15  ;;  %v647_v24 = vrot.slane %v545_v55, %v1326_v17 }
 0x297   : > { %v560_v8 = vpop.xlane.xlu1 %559  ;;  %v585_v9 = vpop.xlane.xlu0 %584 }
 0x298   : > { %v569_v59 = vmul.f32 %v564_v14, %v560_v8  ;;  %v570_v20 = vmul.f32 %v568_v31, %v560_v8  ;;  %v594_v21 = vmul.f32 %v589_v29, %v585_v9  ;;  %v595_v5 = vmul.f32 %v593_v32, %v585_v9 }
 0x29a   : > { %v596_v7 = vadd.f32 %v594_v21, %v569_v59  ;;  %v597_v23 = vadd.f32 %v595_v5, %v570_v20 }
 0x29b   : > { %v612_v22 = vpop.xlane.xlu1 %611 }
 0x29c   : > { %v621_v33 = vmul.f32 %v616_v30, %v612_v22  ;;  %v622_v34 = vmul.f32 %v620_v19, %v612_v22 }
 0x29e   : > { %v623_v26 = vadd.f32 %v621_v33, %v596_v7  ;;  %v624_v36 = vadd.f32 %v622_v34, %v597_v23 }
 0x29f   : > { %v639_v25 = vpop.xlane.xlu1 %638  ;;  %v701_v46 = vpop.permute.xlu0 %700 }
 0x2a0   : > { %v648_v27 = vmul.f32 %v643_v35, %v639_v25  ;;  %v649_v2 = vmul.f32 %v647_v24, %v639_v25 }
 0x2a2   : > { %v650_v28 = vadd.f32 %v648_v27, %v623_v26  ;;  %v651_v4 = vadd.f32 %v649_v2, %v624_v36 }
 0x2a3   : > { %v718_v52 = vpop.permute.xlu1 %717 }
 0x2a4   : > { %v660_v37 = vrot.slane %v650_v28, %v1313_v10  ;;  %v664_v3 = vrot.slane %v651_v4, %v1313_v10  ;;  %v674_v38 = vrot.slane %v650_v28, %v1317_v12  ;;  %v678_v39 = vrot.slane %v651_v4, %v1317_v12 }
 0x2a5   : > { %v690_v40 = vrot.slane %v650_v28, %v1322_v15  ;;  %v694_v41 = vrot.slane %v651_v4, %v1322_v15  ;;  %v706_v42 = vrot.slane %v650_v28, %v1326_v17  ;;  %v710_v43 = vrot.slane %v651_v4, %v1326_v17 }
 0x2a6   : > { %v665_v44 = vmul.f32 %v660_v37, %v655_v1  ;;  %v666_v13 = vmul.f32 %v664_v3, %v655_v1  ;;  %v679_v45 = vmul.f32 %v674_v38, %v669_v63  ;;  %v680_v11 = vmul.f32 %v678_v39, %v669_v63 }
 0x2a7   : > { %v695_v47 = vmul.f32 %v690_v40, %v685_v54  ;;  %v696_v48 = vmul.f32 %v694_v41, %v685_v54  ;;  %v711_v50 = vmul.f32 %v706_v42, %v701_v46  ;;  %v712_v51 = vmul.f32 %v710_v43, %v701_v46 }
 0x2a8   : > { %v681_v16 = vadd.f32 %v679_v45, %v665_v44  ;;  %v682_v10 = vadd.f32 %v680_v11, %v666_v13 }
 0x2aa   : > { %v697_v49 = vadd.f32 %v695_v47, %v681_v16  ;;  %v698_v12 = vadd.f32 %v696_v48, %v682_v10 }
 0x2ac   : > { %v713_v15 = vadd.f32 %v711_v50, %v697_v49  ;;  %v714_v53 = vadd.f32 %v712_v51, %v698_v12 }
 0x2ae   : > { %v720_v56 = vadd.f32 %v718_v52, %v713_v15  ;;  %v721_v17 = vadd.f32 %v718_v52, %v714_v53 }
 0x2b0   : > { %v724_v57 = vcombine.low %v720_v56, %v721_v17  ;;  %v731_v58 = vsel %vm501_vm2, %v720_v56, 0.0  ;;  %v732_v60 = vsel %vm501_vm2, %v721_v17, 0.0 }
 0x2b1   : > { %v733_v61 = vadd.f32 %v732_v60, %v731_v58 }
 0x2b2   : > { %729 = vst [vmem:[%s728_s18] sm:$0xff] %v724_v57 }
 0x2b3   : > { %734 = vadd.xlane.f32.xlu1 %v733_v61 }
 0x340   : > { %v735_v63 = vpop.xlane.xlu1 %734 }
 0x341   : > { %v736_v0 = vadd.f32 %v735_v63, %v730_v62 }
 0x343   : > { %738 = vst.msk [vmem:[#allocation3] sm:$0xf] %vm737_vm3, %v736_v0 }
 0x344 PF: > { %p932_p4 = scmp.ne.s32.totalorder %s1143_s28, 1 }
 0x345   : > { %v1162_v1 = vmov (!%p932_p4), 0   ;;  %v1163_v6 = vmov (!%p932_p4), 839922192   ;;  %v756_v8 = vlaneseq (!%p932_p4)  ;;  %s945_s22 = sshll.u32 (!%p932_p4), %s1139_s27, 3  ;;  %vm768_vm4 = vcmask (!%p932_p4), 1043456  }
 0x346   : > { %742 = sbr.rel (%p932_p4) target bundleno = 1129 (0x469), region = 60  ;;  %1057 = vset.pattern.permute.xlu0 (!%p932_p4), %v1162_v1  ;;  %v754_v55 = vunpack.c.l.s4 (!%p932_p4), %v1163_v6  ;;  %s745_s23 = scalar_lea.vmem (!%p932_p4), [#allocation2], %s945_s22  ;;  %v763_v33 = vld [vmem:[#allocation3 + $0x4] sm:$0xf] (!%p932_p4)  ;;  %vm775_vm5 = vcmask (!%p932_p4), 3072  }
 0x347   : > { %v757_v14 = vshrl.u32 (!%p932_p4), %v756_v8, 7  ;;  %v746_v32 = vld [vmem:[%s745_s23] sm:$0xff] (!%p932_p4) }
 0x348   : > { %v755_v9 = vunpack.c.0.s8 (!%p932_p4), %v754_v55 }
 0x34a   : > { %v747_v18 = vld [vmem:[#allocation3] sm:$0xf] (!%p932_p4)  ;;  %v758_v31 = vsub.s32 (!%p932_p4), %v755_v9, %v757_v14 }
 0x34b   : > { %v748_v54 = vmul.f32 (!%p932_p4), 0.001953125, %v747_v18 }
 0x34d   : > { %751 = vperm.xlu0 %1057, %v748_v54  }
 0x3cc   : > { %v752_v29 = vpop.permute.xlu0 %751 }
 0x3cd   : > { %v759_v30 = vrot.slane %v752_v29, %v758_v31 }
 0x3cf   : > { %v761_v19 = vsub.f32 %v746_v32, %v759_v30 }
 0x3d1   : > { %v764_v59 = vmul.f32 %v761_v19, %v761_v19 }
 0x3d3   : > { %v766_v20 = vcombine.high %v764_v59, %v764_v59  ;;  %v769_v21 = vsel %vm768_vm4, %v764_v59, 0.0 }
 0x3d5   : > { %v770_v5 = vsel %vm768_vm4, %v766_v20, 0.0 }
 0x3d6   : > { %v771_v22 = vadd.f32 %v770_v5, %v769_v21 }
 0x3d8   : > { %772 = vadd.xlane.f32.xlu0 %v771_v22 }
 0x465   : > { %v773_v34 = vpop.xlane.xlu0 %772 }
 0x466   : > { %v774_v7 = vadd.f32 %v773_v34, %v763_v33 }
 0x468   : > { %776 = vst.msk [vmem:[#allocation3 + $0x4] sm:$0xf] %vm775_vm5, %v774_v7 }
 0x469 PF: > { %p935_p5 = scmp.ne.s32.totalorder %s1143_s28, 2 }
 0x46a   : > { %v1164_v35 = vmov (!%p935_p5), 0   ;;  %v781_v26 = vld [vmem:[#allocation3] sm:$0xf] (!%p935_p5)  ;;  %v788_v36 = vld [vmem:[%s1535_s5] sm:$0xf] (!%p935_p5)  ;;  %v804_v40 = vlaneseq (!%p935_p5)  ;;  %s946_s22 = sshll.u32 (!%p935_p5), %s1139_s27, 3 }
 0x46b   : > { %780 = sbr.rel (%p935_p5) target bundleno = 1294 (0x50e), region = 64  ;;  %1058 = vset.pattern.permute.xlu0 (!%p935_p5), %v1164_v35  ;;  %v782_v27 = vmul.f32 (!%p935_p5), 0.001953125, %v781_v26  ;;  %v790_v4 = vld [vmem:[%s1536_s6] sm:$0xf] (!%p935_p5)  ;;  %v1165_v38 = vmov (!%p935_p5), 839922192  }
 0x46c   : > { %v802_v39 = vunpack.c.l.s4 (!%p935_p5), %v1165_v38  ;;  %v805_v42 = vshrl.u32 (!%p935_p5), %v804_v40, 7  ;;  %s795_s23 = scalar_lea.vmem (!%p935_p5), [#allocation2], %s946_s22  ;;  %v824_v47 = vld [vmem:[%s1288_s13] sm:$0xff] (!%p935_p5) }
 0x46d   : > { %v796_v45 = vld [vmem:[%s795_s23] sm:$0xff] (!%p935_p5) }
 0x46e   : > { %v803_v41 = vunpack.c.0.s8 (!%p935_p5), %v802_v39 }
 0x46f   : > { %v784_v23 = vld [vmem:[#allocation3 + $0x4] sm:$0xf] (!%p935_p5) }
 0x470   : > { %v785_v24 = vmul.f32 (!%p935_p5), 0.001953125, %v784_v23  ;;  %v806_v43 = vsub.s32 (!%p935_p5), %v803_v41, %v805_v42 }
 0x472   : > { %v786_v25 = vadd.f32 1e-05, %v785_v24 }
 0x474   : > { %1059 = vrsqrt.f32 %v786_v25 }
 0x47e   : > { %v1060_v2 = vpop.eup %1059 }
 0x47f   : > { %v789_v28 = vmul.f32 %v1060_v2, %v788_v36 }
 0x481   : > { %799 = vperm.xlu0 %1058, %v789_v28   ;;  %v791_v37 = vmul.f32 %v789_v28, %v782_v27 }
 0x483   : > { %v792_v3 = vsub.f32 %v790_v4, %v791_v37 }
 0x485   : > { %812 = vperm.xlu0 %1058, %v792_v3  }
 0x500   : > { %v800_v44 = vpop.permute.xlu0 %799 }
 0x501   : > { %v807_v13 = vrot.slane %v800_v44, %v806_v43 }
 0x503   : > { %v809_v46 = vmul.f32 %v807_v13, %v796_v45 }
 0x504   : > { %v813_v11 = vpop.permute.xlu0 %812 }
 0x505   : > { %v820_v16 = vrot.slane %v813_v11, %v806_v43 }
 0x507   : > { %v822_v10 = vadd.f32 %v820_v16, %v809_v46 }
 0x509   : > { %v823_v48 = vmax.f32 %v822_v10, 0.0 }
 0x50b   : > { %v825_v49 = vadd.f32 %v824_v47, %v823_v48 }
 0x50d   : > { %826 = vst [vmem:[%s297_s16] sm:$0xff] %v825_v49 }
 0x50e PF: > { %p835_p6 = scmp.eq.s32.totalorder %s1143_s28, 2  ;;  %s844_s9 = sshll.u32 %s297_s16, 4  ;;  %s1479_s9 = int_to_ptr.vmem [resolvable:$true] %s844_s9 }
 0x50f   : > { %s828_s22 = scalar_lea.sflag [#allocation5], %s295_s20  ;;  %s1061_s23 = scalar_lea.vmem %s1479_s9, 128 }
 0x510   : > { %s1558_s27 = smov (!%p835_p6, %s1139_s27), 0  ;;  %p1062_p9 = scmp.ne.s32.totalorder %s1479_s9, %s1061_s23 }
 0x511   : > { %s947_s13 = sshll.u32 %s1558_s27, 7  ;;  %s1166_s28 = smov [#allocation4]  }
 0x512   : > { %s842_s18 = scalar_lea.hbm %s1537_s7, %s947_s13  ;;  %p1063_p10 = pnand %p1062_p9, %p1262_p7 }
 0x513   : > { %s1065_s21 = sshll.u32 %s1166_s28, 4  ;;  %s1066_s21 = int_to_ptr.vmem [resolvable:$false] %s1065_s21 }
 0x514   : > { %p1064_p11 = pneg %p1063_p10  ;;  %s1067_s16 = scalar_lea.vmem %s1066_s21, 256 }
 0x515   : > { %p1068_p12 = scmp.lt.s32.totalorder %s1479_s9, %s1066_s21  ;;  %p1069_p13 = scmp.lt.s32.totalorder %s1067_s16, %s1061_s23 }
 0x517   : > { %p1070_p0 = por %p1069_p13, %p1068_p12 }
 0x519   : > { %p1071_p1 = pnand %p1070_p0, %p1064_p11 }
 0x51b   : > { %1074 = shalt.err (!%p1071_p1)
}
 0x51c   : > { %s1075_s27 = scalar_lea.hbm %s842_s18, 128  ;;  %s1079_s12 = scalar_lea.hbm %s1537_s7, 256 }
 0x51d   : > { %p1076_p2 = scmp.ne.s32.totalorder %s842_s18, %s1075_s27  ;;  %p1080_p5 = scmp.lt.u32.totalorder %s842_s18, %s1537_s7 }
 0x51e   : > { %p1081_p6 = scmp.lt.u32.totalorder %s1079_s12, %s1075_s27  ;;  %p1083_p10 = scmp.lt.u32.totalorder %s1075_s27, %s842_s18 }
 0x51f   : > { %p1077_p3 = pnand %p1076_p2, %p1262_p7 }
 0x520   : > { %p1082_p9 = por %p1081_p6, %p1080_p5 }
 0x521   : > { %p1078_p4 = pneg %p1077_p3 }
 0x522   : > { %p1084_p12 = por %p1083_p10, %p1082_p9 }
 0x524   : > { %p1085_p11 = pnand %p1084_p12, %p1078_p4 }
 0x526   : > { %1088 = shalt.err (!%p1085_p11)
}
 0x527   : > { %948 = dma.vmem_to_hbm [thread:$0]  (%p1262_p7), %s1479_s9, 128, %s842_s18, %s828_s22  }
 0x528 PF: > { %p954_p13 = scmp.ge.s32.totalorder %s1155_s8, 2  ;;  %s856_s23 = sand.u32 1, %s1127_s24  }
 0x529   : > { %s857_s0 = scalar_lea.sflag [#allocation5], %s856_s23 }
 0x52a   : > { %p951_p0 = pnand %p954_p13, %p1266_p8 }
 0x52c   : > { %1122 = dma.done.wait (!%p951_p0), %s857_s0, 128  }
 0x52d   : > { %1124 = vsyncadd (!%p951_p0), %s857_s0, 4294967168  ;;  %s20_s8 = sadd.s32 1, %s1155_s8   ;;  %s1542_s24 = smov %s1131_s25 }
 0x52e   : > { %p17_p1 = scmp.ge.s32.totalorder %s20_s8, 8   ;;  %s1543_s25 = smov %s1135_s26 }
 0x52f   : > { %s1544_s26 = smov %s1276_s19  ;;  %s1545_s27 = smov %s1147_s29 }
 0x530   : > { %s1546_s28 = smov %s1151_s30  ;;  %s1547_s29 = smov %s1550_s10 }
 0x531   : > { %s1548_s30 = smov %s1554_s11  ;;  %19 = sbr.rel (!%p17_p1) target bundleno = 7 (0x7), region = 104 }
 0x538   :  { %862 = vsyncpa [#allocation5], 1 }
 0x539   :  { %864 = vsyncpa [#allocation5 + $0x1], 1 }

</bundles_post_ra>
